<compile_context>
chip_gen: v6e
topology: v6e:2x2x1
jax: 0.10.0
libtpu: 0.0.40
codegen_flags: <defaults>
</compile_context>

<pallas_src>
import jax
import jax.numpy as jnp
from jax.experimental import pallas as pl
from jax.experimental.pallas import tpu as pltpu


# ------------------------------ fused kernel -------------------------------

def _branch_combine_kernel(u_ref, w1, b1, w2, b2, w3, b3, wf, bf, out_ref):
    """Branch MLP + folded (last-layer, combine) matmul on one batch tile.

    Weights arrive in compute dtype (bf16); biases/ReLU/accumulation are f32.
    The last two layers are pre-folded in the wrapper:
        c = relu(h3) @ Wfold + bfold,  Wfold = w4 @ beta^T,  bfold = b4 @ beta^T
    """
    cdt = w1.dtype
    h = jnp.dot(u_ref[...], w1[...], preferred_element_type=jnp.float32) + b1[...]
    h = jnp.maximum(h, 0.0)
    h = jnp.dot(h.astype(cdt), w2[...], preferred_element_type=jnp.float32) + b2[...]
    h = jnp.maximum(h, 0.0)
    h = jnp.dot(h.astype(cdt), w3[...], preferred_element_type=jnp.float32) + b3[...]
    h = jnp.maximum(h, 0.0)
    out_ref[...] = (
        jnp.dot(h.astype(cdt), wf[...], preferred_element_type=jnp.float32)
        + bf[...]).astype(out_ref.dtype)


# ------------------------------ parameters ---------------------------------

def _init_linear(key, fan_in, fan_out):
    """Deterministic PyTorch-style Linear init; weight stored as (in, out)."""
    kw, kb = jax.random.split(key)
    bound = 1.0 / jnp.sqrt(jnp.float32(fan_in))
    w = jax.random.uniform(kw, (fan_in, fan_out), jnp.float32, -bound, bound)
    b = jax.random.uniform(kb, (1, fan_out), jnp.float32, -bound, bound)
    return w, b


def init_nonlinear_net(key, n, M, p):
    keys = jax.random.split(key, 7)
    return {
        # net:  Linear(n,M) ReLU Linear(M,M) ReLU Linear(M,M) ReLU Linear(M,p)
        "net": [
            _init_linear(keys[0], n, M),
            _init_linear(keys[1], M, M),
            _init_linear(keys[2], M, M),
            _init_linear(keys[3], M, p),
        ],
        # net1: Linear(1,M) ReLU Linear(M,M) ReLU Linear(M,p)
        "net1": [
            _init_linear(keys[4], 1, M),
            _init_linear(keys[5], M, M),
            _init_linear(keys[6], M, p),
        ],
    }


# ------------------------------ wrapper helpers ------------------------------

_LANE = 128


def _round_up(a, m):
    return (a + m - 1) // m * m


def _pick_batch_tile(B, tile_b):
    """Choose (TB, B_pad). Prefer a single tile or a divisor of B (no jnp.pad)."""
    if B <= tile_b:
        return B, B                       # one tile covering the whole batch
    cap = (tile_b // 8) * 8
    for cand in range(cap, 127, -8):      # prefer a multiple-of-8 divisor of B
        if B % cand == 0:
            return cand, B
    return cap, _round_up(B, cap)         # ragged fallback: pad the batch


def _trunk_and_fold(params, x, M_pad, J_pad, compute_dtype):
    """Hoisted trunk net + fold (tiny; plain XLA, f32): Wfold, bfold, lane-padded."""
    (t1, c1), (t2, c2), (t3, c3) = params["net1"]
    _, _, _, (w4, b4) = params["net"]
    h = jnp.maximum(x @ t1 + c1, 0.0)                     # (J, M)
    h = jnp.maximum(h @ t2 + c2, 0.0)
    beta = h @ t3 + c3                                    # (J, p), no ReLU on last
    wfold = w4 @ beta.T                                   # (M, J)
    bfold = b4 @ beta.T                                   # (1, J)
    M, J = wfold.shape
    wfold = jnp.pad(wfold, ((0, M_pad - M), (0, J_pad - J))).astype(compute_dtype)
    bfold = jnp.pad(bfold, ((0, 0), (0, J_pad - J)))      # bias stays f32
    return wfold, bfold


def _padded_branch_params(params, M_pad, compute_dtype):
    """Zero-pad hidden width to a lane multiple (exact) and cast weights to bf16."""
    (w1, b1), (w2, b2), (w3, b3), _ = params["net"]
    pM = M_pad - w1.shape[1]
    w1 = jnp.pad(w1, ((0, 0), (0, pM))).astype(compute_dtype)
    w2 = jnp.pad(w2, ((0, pM), (0, pM))).astype(compute_dtype)
    w3 = jnp.pad(w3, ((0, pM), (0, pM))).astype(compute_dtype)
    b1 = jnp.pad(b1, ((0, 0), (0, pM)))
    b2 = jnp.pad(b2, ((0, 0), (0, pM)))
    b3 = jnp.pad(b3, ((0, 0), (0, pM)))
    return w1, b1, w2, b2, w3, b3


# ------------------------------- forward -----------------------------------

def nonlinear_net_forward(params, u, x, *, tile_b=2048, compute_dtype=jnp.bfloat16):
    """Pallas implementation of NonlinearNet.forward(u, x) -> (..., J)."""
    u = u.astype(jnp.float32)
    x = x.astype(jnp.float32)

    lead = u.shape[:-1]
    n = u.shape[-1]
    u2d = u.reshape((-1, n))                              # (B, n)
    B = u2d.shape[0]
    J = x.shape[0]                                        # x: (J, 1)
    M = params["net"][0][0].shape[1]

    M_pad = _round_up(M, _LANE)                           # lane-dense hidden width
    J_pad = _round_up(J, _LANE)                           # lane-dense output stores

    TB, B_pad = _pick_batch_tile(B, tile_b)
    u2d = u2d.astype(compute_dtype)
    if B_pad != B:
        u2d = jnp.pad(u2d, ((0, B_pad - B), (0, 0)))

    w1, b1, w2, b2, w3, b3 = _padded_branch_params(params, M_pad, compute_dtype)
    wfold, bfold = _trunk_and_fold(params, x, M_pad, J_pad, compute_dtype)
    params_list = [w1, b1, w2, b2, w3, b3, wfold, bfold]

    def const(a):
        # Full-array block, resident in VMEM for the whole grid.
        return pl.BlockSpec(a.shape, lambda i: (0, 0))

    nbytes = lambda a: a.size * a.dtype.itemsize
    flops = 2 * B_pad * (n * M_pad + 2 * M_pad * M_pad + M_pad * J_pad)
    bytes_accessed = (nbytes(u2d) + sum(nbytes(a) for a in params_list)
                      + B_pad * J_pad * 4)

    c_pad = pl.pallas_call(
        _branch_combine_kernel,
        grid=(B_pad // TB,),
        in_specs=[pl.BlockSpec((TB, n), lambda i: (i, 0))]
                 + [const(a) for a in params_list],
        out_specs=pl.BlockSpec((TB, J_pad), lambda i: (i, 0)),
        out_shape=jax.ShapeDtypeStruct((B_pad, J_pad), jnp.float32),
        compiler_params=pltpu.CompilerParams(
            # Fold is hoisted -> no cross-step scratch dependence -> B axis can
            # shard across TensorCores (2x on v7x, neutral on v5e/v6e).
            dimension_semantics=("parallel",)),
        cost_estimate=pl.CostEstimate(
            flops=flops, transcendentals=0, bytes_accessed=bytes_accessed),
    )(u2d, *params_list)

    return c_pad[:B, :J].reshape(lead + (J,))


# ---------------------------- references -----------------------------------

def _reference_forward(params, u, x):
    """Pure-f32 reference matching the PyTorch module exactly."""
    def mlp(h, layers):
        for i, (w, b) in enumerate(layers):
            h = h @ w + b
            if i < len(layers) - 1:
                h = jnp.maximum(h, 0.0)
        return h
    alpha = mlp(u.reshape((-1, u.shape[-1])), params["net"])
    beta = mlp(x, params["net1"])
    c = jnp.einsum("bi,ji->bj", alpha, beta)
    return c.reshape(u.shape[:-1] + (x.shape[0],))


def _mixed_precision_reference(params, u, x, compute_dtype):
    """Replicates the kernel math (fold + bf16 casts, f32 accumulation) in XLA."""
    (w1, b1), (w2, b2), (w3, b3), (w4, b4) = params["net"]
    (t1, c1), (t2, c2), (t3, c3) = params["net1"]
    h = jnp.maximum(x @ t1 + c1, 0.0)
    h = jnp.maximum(h @ t2 + c2, 0.0)
    beta = h @ t3 + c3
    wf = (w4 @ beta.T).astype(compute_dtype)
    bf = b4 @ beta.T

    def dot32(a, w):
        return jnp.dot(a.astype(compute_dtype), w.astype(compute_dtype),
                       preferred_element_type=jnp.float32)

    a = u.reshape((-1, u.shape[-1]))
    h = jnp.maximum(dot32(a, w1) + b1, 0.0)
    h = jnp.maximum(dot32(h, w2) + b2, 0.0)
    h = jnp.maximum(dot32(h, w3) + b3, 0.0)
    c = dot32(h, wf) + bf
    return c.reshape(u.shape[:-1] + (x.shape[0],))


# --------------------------------- main -------------------------------------

if __name__ == "__main__":
    # Small, module-consistent shapes: n=16 sensor values, hidden M=32,
    # p=8 basis coefficients, J=8 trunk query points, leading dims (2, 4).
    n, M_hidden, p_basis = 16, 32, 8
    J = 8

    key = jax.random.PRNGKey(0)
    kp, ku, kx = jax.random.split(key, 3)

    params = init_nonlinear_net(kp, n, M_hidden, p_basis)
    u = jax.random.normal(ku, (2, 4, n), jnp.float32)      # branch input (..., n)
    x = jax.random.uniform(kx, (J, 1), jnp.float32)        # trunk queries (J, 1)

    out = jax.block_until_ready(nonlinear_net_forward(params, u, x))
    assert out.shape == (2, 4, J), out.shape

    # Tight check: kernel vs identical mixed-precision folded math in XLA.
    ref_mixed = _mixed_precision_reference(params, u, x, jnp.bfloat16)
    assert jnp.allclose(out, ref_mixed, atol=5e-3, rtol=5e-3), (
        float(jnp.max(jnp.abs(out - ref_mixed))))

    # Loose semantic check vs the pure-f32 module reference (difference is
    # only bf16 weight/activation rounding with f32 accumulation).
    ref_f32 = _reference_forward(params, u, x)
    assert jnp.allclose(out, ref_f32, atol=1e-1, rtol=1e-1), (
        float(jnp.max(jnp.abs(out - ref_f32))))

    print("KERNEL_OK")
</pallas_src>

<mosaic_0001>
module attributes {stable_mosaic.version = 11 : i64} {
  func.func @_branch_combine_kernel(%arg0: i32, %arg1: memref<8x16xbf16, #tpu.memory_space<vmem>>, %arg2: memref<16x128xbf16, #tpu.memory_space<vmem>>, %arg3: memref<1x128xf32, #tpu.memory_space<vmem>>, %arg4: memref<128x128xbf16, #tpu.memory_space<vmem>>, %arg5: memref<1x128xf32, #tpu.memory_space<vmem>>, %arg6: memref<128x128xbf16, #tpu.memory_space<vmem>>, %arg7: memref<1x128xf32, #tpu.memory_space<vmem>>, %arg8: memref<128x128xbf16, #tpu.memory_space<vmem>>, %arg9: memref<1x128xf32, #tpu.memory_space<vmem>>, %arg10: memref<8x128xf32, #tpu.memory_space<vmem>>) attributes {dimension_semantics = [#tpu.dimension_semantics<parallel>], iteration_bounds = array<i64: 1>, scalar_prefetch = 0 : i64, scratch_operands = 0 : i64, tpu.core_type = #tpu.core_type<tc>, window_params = [{transform_indices = @transform_0, window_bounds = array<i64: 8, 16>}, {pipeline_mode = #tpu.pipeline_mode<synchronous>, transform_indices = @transform_1, window_bounds = array<i64: 16, 128>}, {pipeline_mode = #tpu.pipeline_mode<synchronous>, transform_indices = @transform_2, window_bounds = array<i64: 1, 128>}, {pipeline_mode = #tpu.pipeline_mode<synchronous>, transform_indices = @transform_3, window_bounds = array<i64: 128, 128>}, {pipeline_mode = #tpu.pipeline_mode<synchronous>, transform_indices = @transform_4, window_bounds = array<i64: 1, 128>}, {pipeline_mode = #tpu.pipeline_mode<synchronous>, transform_indices = @transform_5, window_bounds = array<i64: 128, 128>}, {pipeline_mode = #tpu.pipeline_mode<synchronous>, transform_indices = @transform_6, window_bounds = array<i64: 1, 128>}, {pipeline_mode = #tpu.pipeline_mode<synchronous>, transform_indices = @transform_7, window_bounds = array<i64: 128, 128>}, {pipeline_mode = #tpu.pipeline_mode<synchronous>, transform_indices = @transform_8, window_bounds = array<i64: 1, 128>}, {transform_indices = @transform_9, window_bounds = array<i64: 8, 128>}]} {
    %c0 = arith.constant 0 : index
    %c0_0 = arith.constant 0 : index
    %0 = vector.load %arg1[%c0, %c0_0] : memref<8x16xbf16, #tpu.memory_space<vmem>>, vector<8x16xbf16>
    %c0_1 = arith.constant 0 : index
    %c0_2 = arith.constant 0 : index
    %1 = vector.load %arg2[%c0_1, %c0_2] : memref<16x128xbf16, #tpu.memory_space<vmem>>, vector<16x128xbf16>
    %cst = arith.constant dense<0.000000e+00> : vector<8x128xf32>
    %2 = tpu.matmul %0, %1, %cst {dimension_numbers = #tpu.dot_dimension_numbers<[1], [0], [0], [1], [0, 0, 1, 1], [], []>} : vector<8x16xbf16>, vector<16x128xbf16>, vector<8x128xf32> -> vector<8x128xf32>
    %c0_3 = arith.constant 0 : index
    %c0_4 = arith.constant 0 : index
    %3 = vector.load %arg3[%c0_3, %c0_4] : memref<1x128xf32, #tpu.memory_space<vmem>>, vector<1x128xf32>
    %4 = vector.broadcast %3 : vector<1x128xf32> to vector<8x128xf32>
    %5 = arith.addf %2, %4 : vector<8x128xf32>
    %cst_5 = arith.constant 0.000000e+00 : f32
    %6 = vector.broadcast %cst_5 : f32 to vector<8x128xf32>
    %7 = arith.maximumf %5, %6 : vector<8x128xf32>
    %8 = arith.truncf %7 : vector<8x128xf32> to vector<8x128xbf16>
    %c0_6 = arith.constant 0 : index
    %c0_7 = arith.constant 0 : index
    %9 = vector.load %arg4[%c0_6, %c0_7] : memref<128x128xbf16, #tpu.memory_space<vmem>>, vector<128x128xbf16>
    %cst_8 = arith.constant dense<0.000000e+00> : vector<8x128xf32>
    %10 = tpu.matmul %8, %9, %cst_8 {dimension_numbers = #tpu.dot_dimension_numbers<[1], [0], [0], [1], [0, 0, 1, 1], [], []>} : vector<8x128xbf16>, vector<128x128xbf16>, vector<8x128xf32> -> vector<8x128xf32>
    %c0_9 = arith.constant 0 : index
    %c0_10 = arith.constant 0 : index
    %11 = vector.load %arg5[%c0_9, %c0_10] : memref<1x128xf32, #tpu.memory_space<vmem>>, vector<1x128xf32>
    %12 = vector.broadcast %11 : vector<1x128xf32> to vector<8x128xf32>
    %13 = arith.addf %10, %12 : vector<8x128xf32>
    %cst_11 = arith.constant 0.000000e+00 : f32
    %14 = vector.broadcast %cst_11 : f32 to vector<8x128xf32>
    %15 = arith.maximumf %13, %14 : vector<8x128xf32>
    %16 = arith.truncf %15 : vector<8x128xf32> to vector<8x128xbf16>
    %c0_12 = arith.constant 0 : index
    %c0_13 = arith.constant 0 : index
    %17 = vector.load %arg6[%c0_12, %c0_13] : memref<128x128xbf16, #tpu.memory_space<vmem>>, vector<128x128xbf16>
    %cst_14 = arith.constant dense<0.000000e+00> : vector<8x128xf32>
    %18 = tpu.matmul %16, %17, %cst_14 {dimension_numbers = #tpu.dot_dimension_numbers<[1], [0], [0], [1], [0, 0, 1, 1], [], []>} : vector<8x128xbf16>, vector<128x128xbf16>, vector<8x128xf32> -> vector<8x128xf32>
    %c0_15 = arith.constant 0 : index
    %c0_16 = arith.constant 0 : index
    %19 = vector.load %arg7[%c0_15, %c0_16] : memref<1x128xf32, #tpu.memory_space<vmem>>, vector<1x128xf32>
    %20 = vector.broadcast %19 : vector<1x128xf32> to vector<8x128xf32>
    %21 = arith.addf %18, %20 : vector<8x128xf32>
    %cst_17 = arith.constant 0.000000e+00 : f32
    %22 = vector.broadcast %cst_17 : f32 to vector<8x128xf32>
    %23 = arith.maximumf %21, %22 : vector<8x128xf32>
    %24 = arith.truncf %23 : vector<8x128xf32> to vector<8x128xbf16>
    %c0_18 = arith.constant 0 : index
    %c0_19 = arith.constant 0 : index
    %25 = vector.load %arg8[%c0_18, %c0_19] : memref<128x128xbf16, #tpu.memory_space<vmem>>, vector<128x128xbf16>
    %cst_20 = arith.constant dense<0.000000e+00> : vector<8x128xf32>
    %26 = tpu.matmul %24, %25, %cst_20 {dimension_numbers = #tpu.dot_dimension_numbers<[1], [0], [0], [1], [0, 0, 1, 1], [], []>} : vector<8x128xbf16>, vector<128x128xbf16>, vector<8x128xf32> -> vector<8x128xf32>
    %c0_21 = arith.constant 0 : index
    %c0_22 = arith.constant 0 : index
    %27 = vector.load %arg9[%c0_21, %c0_22] : memref<1x128xf32, #tpu.memory_space<vmem>>, vector<1x128xf32>
    %28 = vector.broadcast %27 : vector<1x128xf32> to vector<8x128xf32>
    %29 = arith.addf %26, %28 : vector<8x128xf32>
    %c0_23 = arith.constant 0 : index
    %c0_24 = arith.constant 0 : index
    %30 = vector.load %arg10[%c0_23, %c0_24] : memref<8x128xf32, #tpu.memory_space<vmem>>, vector<8x128xf32>
    tpu.vector_store %arg10[%c0_23, %c0_24], %29 {strides = array<i32>} : memref<8x128xf32, #tpu.memory_space<vmem>>, vector<8x128xf32>,
    return
  }
  func.func @transform_0(%arg0: i32) -> (i32, i32) {
    %c0_i32 = arith.constant 0 : i32
    %c0_i32_0 = arith.constant 0 : i32
    return %arg0, %c0_i32 : i32, i32
  }
  func.func @transform_1(%arg0: i32) -> (i32, i32) {
    %c0_i32 = arith.constant 0 : i32
    %c0_i32_0 = arith.constant 0 : i32
    %c0_i32_1 = arith.constant 0 : i32
    return %c0_i32, %c0_i32_0 : i32, i32
  }
  func.func @transform_2(%arg0: i32) -> (i32, i32) {
    %c0_i32 = arith.constant 0 : i32
    %c0_i32_0 = arith.constant 0 : i32
    %c0_i32_1 = arith.constant 0 : i32
    return %c0_i32, %c0_i32_0 : i32, i32
  }
  func.func @transform_3(%arg0: i32) -> (i32, i32) {
    %c0_i32 = arith.constant 0 : i32
    %c0_i32_0 = arith.constant 0 : i32
    %c0_i32_1 = arith.constant 0 : i32
    return %c0_i32, %c0_i32_0 : i32, i32
  }
  func.func @transform_4(%arg0: i32) -> (i32, i32) {
    %c0_i32 = arith.constant 0 : i32
    %c0_i32_0 = arith.constant 0 : i32
    %c0_i32_1 = arith.constant 0 : i32
    return %c0_i32, %c0_i32_0 : i32, i32
  }
  func.func @transform_5(%arg0: i32) -> (i32, i32) {
    %c0_i32 = arith.constant 0 : i32
    %c0_i32_0 = arith.constant 0 : i32
    %c0_i32_1 = arith.constant 0 : i32
    return %c0_i32, %c0_i32_0 : i32, i32
  }
  func.func @transform_6(%arg0: i32) -> (i32, i32) {
    %c0_i32 = arith.constant 0 : i32
    %c0_i32_0 = arith.constant 0 : i32
    %c0_i32_1 = arith.constant 0 : i32
    return %c0_i32, %c0_i32_0 : i32, i32
  }
  func.func @transform_7(%arg0: i32) -> (i32, i32) {
    %c0_i32 = arith.constant 0 : i32
    %c0_i32_0 = arith.constant 0 : i32
    %c0_i32_1 = arith.constant 0 : i32
    return %c0_i32, %c0_i32_0 : i32, i32
  }
  func.func @transform_8(%arg0: i32) -> (i32, i32) {
    %c0_i32 = arith.constant 0 : i32
    %c0_i32_0 = arith.constant 0 : i32
    %c0_i32_1 = arith.constant 0 : i32
    return %c0_i32, %c0_i32_0 : i32, i32
  }
  func.func @transform_9(%arg0: i32) -> (i32, i32) {
    %c0_i32 = arith.constant 0 : i32
    %c0_i32_0 = arith.constant 0 : i32
    return %arg0, %c0_i32 : i32, i32
  }
}

</mosaic_0001>

<bundles_post_ra>
// kernel: tpu_custom_call.1
= control target key start
LH: loop header
LB: loop body
LE: loop exit
PB: predicated region body
PF: predicated region fallthrough
CT: control target
= control target key end

     0   :  { %14 = vsyncpa [#allocation3], 0  ;;  %s940_s0 = inlined_call_operand.hbm [shape: bf16[8,16], index: 0, kind: input, shape index: {}]   ;;  %s941_s1 = inlined_call_operand.hbm [shape: bf16[16,128], index: 1, kind: input, shape index: {}]   ;;  %s942_s2 = inlined_call_operand.vmem [shape: f32[1,128], index: 2, kind: input, shape index: {}]   ;;  %s943_s3 = inlined_call_operand.hbm [shape: bf16[128,128], index: 3, kind: input, shape index: {}]   ;;  %s944_s4 = inlined_call_operand.vmem [shape: f32[1,128], index: 4, kind: input, shape index: {}]   ;;  %s945_s5 = inlined_call_operand.hbm [shape: bf16[128,128], index: 5, kind: input, shape index: {}]   ;;  %s946_s6 = inlined_call_operand.vmem [shape: f32[1,128], index: 6, kind: input, shape index: {}]   ;;  %s947_s7 = inlined_call_operand.hbm [shape: bf16[128,128], index: 7, kind: input, shape index: {}]   ;;  %s948_s8 = inlined_call_operand.vmem [shape: f32[1,128], index: 8, kind: input, shape index: {}]   ;;  %s949_s9 = inlined_call_operand.hbm [shape: f32[8,128], index: 9, kind: output, shape index: {}]  }
   0x1   :  { %15 = vsyncpa [#allocation6], 0 }
   0x2   :  { %16 = vsyncpa [#allocation9], 0 }
   0x3   :  { %17 = vsyncpa [#allocation4], 0  ;;  %s805_s30 = smov [#allocation5]  }
   0x4   :  { %s33_s10 = sshll.u32 %s805_s30, 4  ;;  %s34_s10 = int_to_ptr.vmem [resolvable:$true] %s33_s10 }
   0x5   :  { %s685_s11 = scalar_lea.vmem %s34_s10, 128  ;;  %p690_p1 = scmp.lt.s32.totalorder %s34_s10, %s34_s10 }
   0x6   :  { %p686_p0 = scmp.ne.s32.totalorder %s34_s10, %s685_s11  ;;  %p691_p2 = scmp.lt.s32.totalorder %s685_s11, %s685_s11 }
   0x8   :  { %p692_p3 = por %p691_p2, %p690_p1 }
   0xa   :  { %p693_p4 = pnand %p692_p3, %p686_p0 }
   0xc   :  { %696 = shalt.err (!%p693_p4)
}
   0xd   :  { %s806_s12 = smov 64   ;;  %s807_s13 = smov 4  }
   0xe   :  { %39 = dma.hbm_to_vmem [thread:$0]  %s941_s1, 128, %s34_s10, [#allocation6], %s806_s12, %s806_s12, %s807_s13  }
   0xf   :  { %s808_s16 = smov [#allocation8]   ;;  %s809_s18 = smov [#allocation2]  }
  0x10   :  { %s61_s17 = sshll.u32 %s808_s16, 4  ;;  %s24_s19 = sshll.u32 %s809_s18, 4  ;;  %s62_s17 = int_to_ptr.vmem [resolvable:$true] %s61_s17  ;;  %s25_s19 = int_to_ptr.vmem [resolvable:$true] %s24_s19 }
  0x11   :  { %s705_s20 = scalar_lea.vmem %s62_s17, 1024  ;;  %p710_p6 = scmp.lt.s32.totalorder %s62_s17, %s62_s17 }
  0x12   :  { %p706_p5 = scmp.ne.s32.totalorder %s62_s17, %s705_s20  ;;  %p711_p7 = scmp.lt.s32.totalorder %s705_s20, %s705_s20 }
  0x14   :  { %p712_p8 = por %p711_p7, %p710_p6 }
  0x16   :  { %p713_p9 = pnand %p712_p8, %p706_p5 }
  0x18   :  { %716 = shalt.err (!%p713_p9)
}
  0x19   :  { %67 = dma.hbm_to_vmem [thread:$0]  %s945_s5, 1024, %s62_s17, [#allocation9], %s806_s12, %s806_s12, %s807_s13  }
  0x1a   :  { %s725_s1 = scalar_lea.vmem %s25_s19, 64  ;;  %p730_p11 = scmp.lt.s32.totalorder %s25_s19, %s25_s19 }
  0x1b   :  { %p726_p10 = scmp.ne.s32.totalorder %s25_s19, %s725_s1  ;;  %p731_p12 = scmp.lt.s32.totalorder %s725_s1, %s725_s1 }
  0x1d   :  { %p732_p13 = por %p731_p12, %p730_p11 }
  0x1f   :  { %p733_p0 = pnand %p732_p13, %p726_p10 }
  0x21   :  { %736 = shalt.err (!%p733_p0)
}
  0x22   :  { %27 = dma.hbm_to_vmem [thread:$0]  %s940_s0, 64, %s25_s19, [#allocation3]  }
  0x23   :  { %s810_s25 = smov [#allocation7]   ;;  %s811_s27 = smov [#allocation10]  }
  0x24   :  { %s47_s26 = sshll.u32 %s810_s25, 4  ;;  %s75_s28 = sshll.u32 %s811_s27, 4  ;;  %s48_s26 = int_to_ptr.vmem [resolvable:$true] %s47_s26  ;;  %s76_s28 = int_to_ptr.vmem [resolvable:$true] %s75_s28 }
  0x25   :  { %s745_s29 = scalar_lea.vmem %s48_s26, 1024  ;;  %p750_p2 = scmp.lt.s32.totalorder %s48_s26, %s48_s26 }
  0x26   :  { %p746_p1 = scmp.ne.s32.totalorder %s48_s26, %s745_s29  ;;  %p751_p3 = scmp.lt.s32.totalorder %s745_s29, %s745_s29 }
  0x28   :  { %p752_p4 = por %p751_p3, %p750_p2 }
  0x2a   :  { %p753_p5 = pnand %p752_p4, %p746_p1 }
  0x2c   :  { %756 = shalt.err (!%p753_p5)
}
  0x2d   :  { %53 = dma.hbm_to_vmem [thread:$0]  %s943_s3, 1024, %s48_s26, [#allocation6], %s806_s12, %s806_s12, %s807_s13  }
  0x2e   :  { %s765_s0 = scalar_lea.vmem %s76_s28, 1024  ;;  %p770_p7 = scmp.lt.s32.totalorder %s76_s28, %s76_s28 }
  0x2f   :  { %p766_p6 = scmp.ne.s32.totalorder %s76_s28, %s765_s0  ;;  %p771_p8 = scmp.lt.s32.totalorder %s765_s0, %s765_s0 }
  0x31   :  { %p772_p9 = por %p771_p8, %p770_p7 }
  0x33   :  { %p773_p10 = pnand %p772_p9, %p766_p6 }
  0x35   :  { %776 = shalt.err (!%p773_p10)
}
  0x36   :  { %81 = dma.hbm_to_vmem [thread:$0]  %s947_s7, 1024, %s76_s28, [#allocation9], %s806_s12, %s806_s12, %s807_s13  }
  0x37   :  { %797 = dma.done.wait [#allocation3], 64  }
  0x38   :  { %798 = vsyncadd [#allocation3], 4294967232 }
  0x39   :  { %799 = dma.done.wait [#allocation6], 1152  }
  0x3a   :  { %800 = vsyncadd [#allocation6], 4294966144 }
  0x3b   :  { %801 = dma.done.wait [#allocation9], 2048  }
  0x3c   :  { %802 = vsyncadd [#allocation9], 4294965248  ;;  %v812_v0 = vmov 0.0   ;;  %vm813_vm0 = vmmov 0   ;;  %v652_v1 = vld [vmem:[#allocation5] sm:$0xff]   ;;  %vm116_vm1 = vcmask 130048  }
  0x3d   :  { %576 = vmatprep.subr.bf16.mxu0 %v812_v0  ;;  %578 = vmatprep.mubr.msk.bf16.mxu0 %vm813_vm0, %v812_v0  ;;  %v100_v2 = vld [vmem:[#allocation2] sm:$0xf]  ;;  %v653_v3 = vld [vmem:[#allocation7 + $0x38] sm:$0xff]   ;;  %v655_v5 = vld [vmem:[#allocation7 + $0x28] sm:$0xff]   ;;  %s814_s16 = smov [#allocation11]  }
  0x3e   :  { %582 = vmatprep.subr.bf16.mxu1 %v812_v0  ;;  %598 = vmatprep.mubr.msk.bf16.mxu1 %vm813_vm0, %v812_v0  ;;  %v654_v4 = vld [vmem:[#allocation7 + $0x30] sm:$0xff]   ;;  %v656_v6 = vld [vmem:[#allocation7 + $0x20] sm:$0xff]   ;;  %v657_v7 = vld [vmem:[#allocation7 + $0x18] sm:$0xff]   ;;  %s506_s17 = sshll.u32 %s814_s16, 4  ;;  %s507_s17 = int_to_ptr.vmem [resolvable:$true] %s506_s17 }
  0x3f   :  { %577 = vmatpush3.bf16.msra.mxu0 %v652_v1  ;;  %583 = vmatpush3.bf16.msra.mxu1 %v653_v3  ;;  %v658_v8 = vld [vmem:[#allocation7 + $0x10] sm:$0xff]   ;;  %v659_v9 = vld [vmem:[#allocation7 + $0x8] sm:$0xff]   ;;  %v660_v10 = vld [vmem:[#allocation7] sm:$0xff]   ;;  %p782_p12 = scmp.lt.s32.totalorder %s507_s17, %s507_s17 }
  0x40   :  { %602 = vmatprep.subr.bf16.mxu0 %v812_v0  ;;  %584 = vmatprep.subr.bf16.mxu1 %v812_v0  ;;  %v661_v11 = vld [vmem:[#allocation8 + $0x38] sm:$0xff]   ;;  %v662_v12 = vld [vmem:[#allocation8 + $0x30] sm:$0xff]   ;;  %v663_v13 = vld [vmem:[#allocation8 + $0x28] sm:$0xff]  }
  0x41   :  { %v664_v14 = vld [vmem:[#allocation8 + $0x20] sm:$0xff]   ;;  %v665_v15 = vld [vmem:[#allocation8 + $0x18] sm:$0xff]   ;;  %v666_v16 = vld [vmem:[#allocation8 + $0x10] sm:$0xff]  }
  0x42   :  { %579 = vmatmul.mubr.msk.bf16.vlgmr.msra.gmra.mxu0 %vm116_vm1, %v100_v2  ;;  %v517_v17 = vld [vmem:[%s942_s2] ss:$0 sm:$0xff]  ;;  %v667_v25 = vld [vmem:[#allocation8 + $0x8] sm:$0xff]   ;;  %v668_v26 = vld [vmem:[#allocation8] sm:$0xff]  }
  0x43   :  { %618 = vmatprep.mubr.msk.bf16.mxu0 %vm813_vm0, %v812_v0  ;;  %585 = vmatpush3.bf16.msra.mxu1 %v654_v4  ;;  %v669_v27 = vld [vmem:[#allocation10 + $0x38] sm:$0xff]   ;;  %v670_v28 = vld [vmem:[#allocation10 + $0x30] sm:$0xff]   ;;  %v671_v29 = vld [vmem:[#allocation10 + $0x28] sm:$0xff]  }
  0x44   :  { %586 = vmatprep.subr.bf16.mxu1 %v812_v0  ;;  %603 = vmatpush3.bf16.msra.mxu0 %v661_v11  ;;  %v672_v30 = vld [vmem:[#allocation10 + $0x20] sm:$0xff]   ;;  %v673_v31 = vld [vmem:[#allocation10 + $0x18] sm:$0xff]   ;;  %v674_v32 = vld [vmem:[#allocation10 + $0x10] sm:$0xff]  }
  0x45   :  { %604 = vmatprep.subr.bf16.mxu0 %v812_v0  ;;  %v520_v33 = vld [vmem:[%s944_s4] ss:$0 sm:$0xff]  ;;  %v675_v41 = vld [vmem:[#allocation10 + $0x8] sm:$0xff]   ;;  %v676_v42 = vld [vmem:[#allocation10] sm:$0xff]  }
  0x46   :  { %v529_v43 = vld [vmem:[%s946_s6] ss:$0 sm:$0xff]  ;;  %s777_s6 = scalar_lea.vmem %s507_s17, 128 }
  0x47   :  { %587 = vmatpush3.bf16.msra.mxu1 %v655_v5  ;;  %v538_v51 = vld [vmem:[%s948_s8] ss:$0 sm:$0xff]  ;;  %p778_p11 = scmp.ne.s32.totalorder %s507_s17, %s777_s6  ;;  %p783_p13 = scmp.lt.s32.totalorder %s777_s6, %s777_s6 }
  0x48   :  { %588 = vmatprep.subr.bf16.mxu1 %v812_v0  ;;  %605 = vmatpush3.bf16.msra.mxu0 %v662_v12 }
  0x49   :  { %606 = vmatprep.subr.bf16.mxu0 %v812_v0  ;;  %p784_p0 = por %p783_p13, %p782_p12 }
  0x4b   :  { %589 = vmatpush3.bf16.msra.mxu1 %v656_v6  ;;  %p785_p1 = pnand %p784_p0, %p778_p11 }
  0x4c   :  { %590 = vmatprep.subr.bf16.mxu1 %v812_v0  ;;  %607 = vmatpush3.bf16.msra.mxu0 %v663_v13 }
  0x4d   :  { %608 = vmatprep.subr.bf16.mxu0 %v812_v0 }
  0x4f   :  { %591 = vmatpush3.bf16.msra.mxu1 %v657_v7 }
  0x50   :  { %592 = vmatprep.subr.bf16.mxu1 %v812_v0  ;;  %609 = vmatpush3.bf16.msra.mxu0 %v664_v14 }
  0x51   :  { %610 = vmatprep.subr.bf16.mxu0 %v812_v0 }
  0x53   :  { %593 = vmatpush3.bf16.msra.mxu1 %v658_v8 }
  0x54   :  { %594 = vmatprep.subr.bf16.mxu1 %v812_v0  ;;  %611 = vmatpush3.bf16.msra.mxu0 %v665_v15 }
  0x55   :  { %612 = vmatprep.subr.bf16.mxu0 %v812_v0 }
  0x57   :  { %595 = vmatpush3.bf16.msra.mxu1 %v659_v9 }
  0x58   :  { %596 = vmatprep.subr.bf16.mxu1 %v812_v0  ;;  %613 = vmatpush3.bf16.msra.mxu0 %v666_v16 }
  0x59   :  { %614 = vmatprep.subr.bf16.mxu0 %v812_v0 }
  0x5b   :  { %597 = vmatpush3.bf16.msra.mxu1 %v660_v10 }
  0x5c   :  { %622 = vmatprep.subr.bf16.mxu1 %v812_v0  ;;  %615 = vmatpush3.bf16.msra.mxu0 %v667_v25 }
  0x5d   :  { %616 = vmatprep.subr.bf16.mxu0 %v812_v0 }
  0x60   :  { %617 = vmatpush3.bf16.msra.mxu0 %v668_v26 }
 0x102   :  { %v154_v18 = vpop.f32.mrf.mxu0 }
 0x103   :  { %v155_v19 = vadd.f32 %v517_v17, %v154_v18 }
 0x104   :  { %v580_v20 = vpop.f32.mrf.mxu0 }
 0x105   :  { %v160_v21 = vmax.f32 %v155_v19, 0.0 }
 0x106   :  { %v157_v22 = vpop.f32.mrf.mxu0 }
 0x107   :  { %v161_v23 = vpack.c.bf16 %v160_v21, %v160_v21 }
 0x108   :  { %v581_v24 = vpop.f32.mrf.mxu0 }
 0x109   :  { %599 = vmatmul.mubr.bf16.vlgmr.msra.gmra.mxu1 %v161_v23 }
 0x10a   :  { %638 = vmatprep.mubr.msk.bf16.mxu1 %vm813_vm0, %v812_v0  ;;  %623 = vmatpush3.bf16.msra.mxu1 %v669_v27 }
 0x10b   :  { %624 = vmatprep.subr.bf16.mxu1 %v812_v0 }
 0x10e   :  { %625 = vmatpush3.bf16.msra.mxu1 %v670_v28 }
 0x10f   :  { %626 = vmatprep.subr.bf16.mxu1 %v812_v0 }
 0x112   :  { %627 = vmatpush3.bf16.msra.mxu1 %v671_v29 }
 0x113   :  { %628 = vmatprep.subr.bf16.mxu1 %v812_v0 }
 0x116   :  { %629 = vmatpush3.bf16.msra.mxu1 %v672_v30 }
 0x117   :  { %630 = vmatprep.subr.bf16.mxu1 %v812_v0 }
 0x11a   :  { %631 = vmatpush3.bf16.msra.mxu1 %v673_v31 }
 0x11b   :  { %632 = vmatprep.subr.bf16.mxu1 %v812_v0 }
 0x11e   :  { %633 = vmatpush3.bf16.msra.mxu1 %v674_v32 }
 0x11f   :  { %634 = vmatprep.subr.bf16.mxu1 %v812_v0 }
 0x122   :  { %635 = vmatpush3.bf16.msra.mxu1 %v675_v41 }
 0x123   :  { %636 = vmatprep.subr.bf16.mxu1 %v812_v0 }
 0x126   :  { %637 = vmatpush3.bf16.msra.mxu1 %v676_v42 }
 0x1c9   :  { %v267_v34 = vpop.f32.mrf.mxu1 }
 0x1ca   :  { %v268_v35 = vadd.f32 %v520_v33, %v267_v34 }
 0x1cb   :  { %v600_v36 = vpop.f32.mrf.mxu1 }
 0x1cc   :  { %v273_v37 = vmax.f32 %v268_v35, 0.0 }
 0x1cd   :  { %v270_v38 = vpop.f32.mrf.mxu1 }
 0x1ce   :  { %v274_v39 = vpack.c.bf16 %v273_v37, %v273_v37 }
 0x1cf   :  { %v601_v40 = vpop.f32.mrf.mxu1 }
 0x1d0   :  { %619 = vmatmul.mubr.bf16.vlgmr.msra.gmra.mxu0 %v274_v39 }
 0x290   :  { %v380_v44 = vpop.f32.mrf.mxu0 }
 0x291   :  { %v381_v45 = vadd.f32 %v529_v43, %v380_v44 }
 0x292   :  { %v620_v46 = vpop.f32.mrf.mxu0 }
 0x293   :  { %v386_v47 = vmax.f32 %v381_v45, 0.0 }
 0x294   :  { %v383_v48 = vpop.f32.mrf.mxu0 }
 0x295   :  { %v387_v49 = vpack.c.bf16 %v386_v47, %v386_v47 }
 0x296   :  { %v621_v50 = vpop.f32.mrf.mxu0 }
 0x297   :  { %639 = vmatmul.mubr.bf16.vlgmr.msra.gmra.mxu1 %v387_v49 }
 0x357   :  { %v493_v52 = vpop.f32.mrf.mxu1 }
 0x358   :  { %v494_v53 = vadd.f32 %v538_v51, %v493_v52 }
 0x359   :  { %v640_v54 = vpop.f32.mrf.mxu1 }
 0x35a   :  { %499 = vst [vmem:[#allocation11] sm:$0xff] %v494_v53 }
 0x35b   :  { %v496_v55 = vpop.f32.mrf.mxu1 }
 0x35c   :  { %788 = shalt.err (!%p785_p1)
}
 0x35d   :  { %509 = dma.vmem_to_hbm [thread:$0]  %s507_s17, 128, %s949_s9, [#allocation4]   ;;  %v641_v56 = vpop.f32.mrf.mxu1 }
 0x35e   :  { %803 = dma.done.wait [#allocation4], 128  }
 0x35f   :  { %804 = vsyncadd [#allocation4], 4294967168 }
 0x360   :  { %513 = vsyncpa [#allocation3], 1 }
 0x361   :  { %514 = vsyncpa [#allocation6], 1 }
 0x362   :  { %515 = vsyncpa [#allocation9], 1 }
 0x363   :  { %516 = vsyncpa [#allocation4], 1 }

</bundles_post_ra>
